<compile_context>
chip_gen: v6e
topology: v6e:2x2x1
jax: 0.10.0
libtpu: 0.0.40
codegen_flags: <defaults>
</compile_context>

<pallas_src>
import functools

import jax
import jax.numpy as jnp
from jax import lax
from jax.experimental import pallas as pl
from jax.experimental.pallas import tpu as pltpu

_LANE = 128
_SUBLANE = 8


def _softplus(z):
    # numerically stable softplus: max(z, 0) + log1p(exp(-|z|))
    return jnp.maximum(z, 0.0) + jnp.log1p(jnp.exp(-jnp.abs(z)))


def _elementwise(x, gan_type, target_is_real, is_disc, real_label_val, fake_label_val):
    """Per-element contribution; mean of this over valid elements == the loss
    (before the generator loss_weight scaling)."""
    if gan_type == "vanilla":
        # BCEWithLogitsLoss vs constant target t: softplus(x) - t * x
        t = real_label_val if target_is_real else fake_label_val
        return _softplus(x) - t * x
    elif gan_type == "lsgan":
        t = real_label_val if target_is_real else fake_label_val
        d = x - t
        return d * d
    elif gan_type == "wgan":
        return -x if target_is_real else x
    elif gan_type == "wgan_softplus":
        return _softplus(-x) if target_is_real else _softplus(x)
    elif gan_type == "hinge":
        if is_disc:
            z = -x if target_is_real else x
            return jnp.maximum(1.0 + z, 0.0)  # ReLU(1 + z)
        else:
            return -x
    else:
        raise NotImplementedError(f"GAN type {gan_type} is not implemented.")


def _gan_loss_kernel(x_ref, o_ref, *, tile_rows, sub_rows, valid_rows_last,
                     gan_type, target_is_real, is_disc,
                     real_label_val, fake_label_val):
    i = pl.program_id(0)

    # o_ref is the single resident (8, 128) partial-sum slab (same block for
    # every grid step -> one HBM writeback at the end).
    @pl.when(i == 0)
    def _():
        o_ref[...] = jnp.zeros_like(o_ref)

    n_sub = tile_rows // sub_rows

    def accum(start, limit_rows):
        # One fused elementwise+fold per sub-slab, accumulated straight into
        # the resident output block (keeps f32 temporaries <= 256 KiB instead
        # of materializing a multi-MiB intermediate for the whole tile).
        xs = x_ref[pl.ds(start, sub_rows), :].astype(jnp.float32)
        v = _elementwise(xs, gan_type, target_is_real, is_disc,
                         real_label_val, fake_label_val)
        if limit_rows is not None:
            row = start + lax.broadcasted_iota(jnp.int32, (sub_rows, _LANE), 0)
            v = jnp.where(row < limit_rows, v, 0.0)
        # Fold (sub_rows, 128) -> (8, 128) with pure vreg adds (VPU only).
        o_ref[...] += v.reshape(sub_rows // _SUBLANE, _SUBLANE, _LANE).sum(axis=0)

    def run(limit_rows):
        for s in range(n_sub):          # static unroll, static slice offsets
            accum(s * sub_rows, limit_rows)

    if valid_rows_last is None:
        # Grid divides evenly: no masking anywhere, single fused accumulate.
        run(None)
    else:
        is_last = i == pl.num_programs(0) - 1

        @pl.when(jnp.logical_not(is_last))
        def _():
            run(None)

        @pl.when(is_last)
        def _():
            # Trailing partial block: rows >= valid_rows_last hold stale VMEM
            # contents (the DMA only copies the in-bounds rows) -> row mask.
            run(valid_rows_last)


def gan_loss(x, *, gan_type, target_is_real, is_disc=False,
             real_label_val=1.0, fake_label_val=0.0, loss_weight=1.0):
    """Pallas equivalent of GANLoss(gan_type, ...)(x, target_is_real, is_disc).

    Returns a scalar float32 loss.
    """
    n = int(x.size)
    flat = jnp.ravel(x)  # free reshape; input keeps its dtype on the wire

    # Lane-dense (rows, 128) view.  Pad only when the element count is not a
    # multiple of 128 (at most 127 zeros; their contribution is removed
    # analytically in the epilogue), or when the input is smaller than one
    # (8, 128) vreg slab.  128-aligned inputs are fully zero-copy here.
    # TODO(synk): a fully zero-copy path for n % 128 != 0 would tile the
    # original trailing dim instead of the raveled lane-dense view.
    min_elems = _SUBLANE * _LANE
    padded = max(min_elems, ((n + _LANE - 1) // _LANE) * _LANE)
    if padded != n:
        flat = jnp.pad(flat, (0, padded - n))
    rows = padded // _LANE
    x2 = flat.reshape(rows, _LANE)

    itemsize = jnp.dtype(flat.dtype).itemsize
    # ~2 MiB of HBM-side data per grid step (double-buffered ~4 MiB VMEM).
    cap = 8192 if itemsize <= 2 else 4096
    tile_rows = min(cap, (rows // _SUBLANE) * _SUBLANE)   # <= rows, multiple of 8
    num_tiles = pl.cdiv(rows, tile_rows)
    rem_rows = rows - (num_tiles - 1) * tile_rows
    valid_rows_last = None if rem_rows == tile_rows else rem_rows

    # Sub-slab size for the in-kernel fused elementwise+fold loop.
    sub_rows = tile_rows
    for cand in (512, 256, 128, 64, 32, 16, 8):
        if tile_rows % cand == 0:
            sub_rows = cand
            break

    kernel = functools.partial(
        _gan_loss_kernel,
        tile_rows=tile_rows,
        sub_rows=sub_rows,
        valid_rows_last=valid_rows_last,
        gan_type=gan_type,
        target_is_real=bool(target_is_real),
        is_disc=bool(is_disc),
        real_label_val=float(real_label_val),
        fake_label_val=float(fake_label_val),
    )

    transcendental = gan_type in ("vanilla", "wgan_softplus")
    partials = pl.pallas_call(
        kernel,
        out_shape=jax.ShapeDtypeStruct((_SUBLANE, _LANE), jnp.float32),
        grid_spec=pltpu.PrefetchScalarGridSpec(
            num_scalar_prefetch=0,
            grid=(num_tiles,),
            in_specs=[pl.BlockSpec((tile_rows, _LANE), lambda i: (i, 0))],
            out_specs=pl.BlockSpec((_SUBLANE, _LANE), lambda i: (0, 0)),
        ),
        compiler_params=pltpu.CompilerParams(
            # TODO(synk): use CORE_PARALLEL / core_map on a leading axis to
            # engage v7x's second TensorCore for the EUP-bound variants
            # (vanilla / wgan_softplus); plain "parallel" is a codegen no-op.
            dimension_semantics=("arbitrary",),
            vmem_limit_bytes=32 * 1024 * 1024,
        ),
        cost_estimate=pl.CostEstimate(
            flops=6 * padded,
            transcendentals=(2 * padded) if transcendental else 0,
            bytes_accessed=padded * itemsize + _SUBLANE * _LANE * 4,
        ),
    )(x2)

    # Tiny scalar epilogue: reduce the (8, 128) partial slab, remove the
    # padded-zero contribution analytically, divide by N, apply loss_weight.
    total = jnp.sum(partials, dtype=jnp.float32)
    pad_count = padded - n
    if pad_count:
        f0 = _elementwise(jnp.float32(0.0), gan_type, bool(target_is_real),
                          bool(is_disc), float(real_label_val), float(fake_label_val))
        total = total - jnp.float32(pad_count) * f0
    loss = total / jnp.float32(n)
    return loss if is_disc else loss * jnp.float32(loss_weight)


def _gan_loss_ref(x, *, gan_type, target_is_real, is_disc=False,
                  real_label_val=1.0, fake_label_val=0.0, loss_weight=1.0):
    """Pure-jnp reference matching the PyTorch module semantics."""
    xf = x.astype(jnp.float32)
    v = _elementwise(xf, gan_type, bool(target_is_real), bool(is_disc),
                     float(real_label_val), float(fake_label_val))
    loss = jnp.mean(v)
    return loss if is_disc else loss * jnp.float32(loss_weight)


if __name__ == "__main__":
    key = jax.random.PRNGKey(0)
    k1, k2, k3, k4 = jax.random.split(key, 4)

    # discriminator-style logits / critic scores, NCHW
    x_small = jax.random.normal(k1, (2, 4, 16, 16), dtype=jnp.float32)   # aligned, 1 tile
    x_odd = jax.random.normal(k2, (2, 3, 30, 40), dtype=jnp.float32)     # misaligned tail
    x_big = jax.random.normal(k3, (1, 4, 300, 301), dtype=jnp.float32)   # multi-tile, partial trailing block
    x_bf16 = jax.random.normal(k4, (2, 4, 16, 16), dtype=jnp.bfloat16)   # low-precision input

    cases = [
        (x_small, dict(gan_type="vanilla", target_is_real=True, is_disc=False, loss_weight=0.5)),
        (x_small, dict(gan_type="vanilla", target_is_real=False, is_disc=True)),
        (x_small, dict(gan_type="lsgan", target_is_real=True, is_disc=True)),
        (x_small, dict(gan_type="lsgan", target_is_real=False, is_disc=False, loss_weight=2.0)),
        (x_small, dict(gan_type="wgan", target_is_real=True, is_disc=False, loss_weight=3.0)),
        (x_small, dict(gan_type="wgan", target_is_real=False, is_disc=True)),
        (x_small, dict(gan_type="wgan_softplus", target_is_real=True, is_disc=True)),
        (x_small, dict(gan_type="wgan_softplus", target_is_real=False, is_disc=False)),
        (x_small, dict(gan_type="hinge", target_is_real=True, is_disc=True)),
        (x_small, dict(gan_type="hinge", target_is_real=False, is_disc=True)),
        (x_small, dict(gan_type="hinge", target_is_real=True, is_disc=False, loss_weight=0.1)),
        (x_odd, dict(gan_type="vanilla", target_is_real=True, is_disc=True)),
        (x_odd, dict(gan_type="hinge", target_is_real=False, is_disc=True)),
        (x_big, dict(gan_type="lsgan", target_is_real=True, is_disc=False, loss_weight=0.25)),
        (x_big, dict(gan_type="wgan_softplus", target_is_real=False, is_disc=True)),
        (x_bf16, dict(gan_type="vanilla", target_is_real=True, is_disc=True)),
        (x_bf16, dict(gan_type="hinge", target_is_real=True, is_disc=False, loss_weight=2.0)),
    ]

    for xin, cfg in cases:
        out = jax.block_until_ready(gan_loss(xin, **cfg))
        ref = jax.block_until_ready(_gan_loss_ref(xin, **cfg))
        assert jnp.allclose(out, ref, rtol=1e-5, atol=1e-5), (cfg, xin.shape, out, ref)

    print("KERNEL_OK")
</pallas_src>

<mosaic_0001>
module attributes {stable_mosaic.version = 11 : i64} {
  func.func @_gan_loss_kernel(%arg0: i32, %arg1: memref<16x128xf32, #tpu.memory_space<vmem>>, %arg2: memref<8x128xf32, #tpu.memory_space<vmem>>) attributes {dimension_semantics = [#tpu.dimension_semantics<arbitrary>], iteration_bounds = array<i64: 1>, scalar_prefetch = 0 : i64, scratch_operands = 0 : i64, tpu.core_type = #tpu.core_type<tc>, window_params = [{transform_indices = @transform_0, window_bounds = array<i64: 16, 128>}, {pipeline_mode = #tpu.pipeline_mode<synchronous>, transform_indices = @transform_1, window_bounds = array<i64: 8, 128>}]} {
    %c0_i32 = arith.constant 0 : i32
    %0 = arith.cmpi eq, %arg0, %c0_i32 : i32
    %1 = arith.extui %0 : i1 to i32
    %c0_i32_0 = arith.constant 0 : i32
    %2 = arith.cmpi ne, %1, %c0_i32_0 : i32
    scf.if %2 {
      %cst_9 = arith.constant 0.000000e+00 : f32
      %20 = vector.broadcast %cst_9 : f32 to vector<8x128xf32>
      %c0_10 = arith.constant 0 : index
      %c0_11 = arith.constant 0 : index
      %21 = vector.load %arg2[%c0_10, %c0_11] : memref<8x128xf32, #tpu.memory_space<vmem>>, vector<8x128xf32>
      tpu.vector_store %arg2[%c0_10, %c0_11], %20 {strides = array<i32>} : memref<8x128xf32, #tpu.memory_space<vmem>>, vector<8x128xf32>,
    } else {
    }
    %c0 = arith.constant 0 : index
    %c0_1 = arith.constant 0 : index
    %3 = vector.load %arg1[%c0, %c0_1] : memref<16x128xf32, #tpu.memory_space<vmem>>, vector<16x128xf32>
    %cst = arith.constant 0.000000e+00 : f32
    %4 = vector.broadcast %cst : f32 to vector<16x128xf32>
    %5 = arith.maximumf %3, %4 : vector<16x128xf32>
    %6 = math.absf %3 : vector<16x128xf32>
    %cst_2 = arith.constant 0.000000e+00 : f32
    %7 = vector.broadcast %cst_2 : f32 to vector<16x128xf32>
    %8 = arith.subf %7, %6 : vector<16x128xf32>
    %9 = math.exp %8 : vector<16x128xf32>
    %10 = math.log1p %9 : vector<16x128xf32>
    %11 = arith.addf %5, %10 : vector<16x128xf32>
    %cst_3 = arith.constant 1.000000e+00 : f32
    %12 = vector.broadcast %cst_3 : f32 to vector<16x128xf32>
    %13 = arith.mulf %12, %3 : vector<16x128xf32>
    %14 = arith.subf %11, %13 : vector<16x128xf32>
    %c0_4 = arith.constant 0 : index
    %c0_5 = arith.constant 0 : index
    %15 = vector.load %arg2[%c0_4, %c0_5] : memref<8x128xf32, #tpu.memory_space<vmem>>, vector<8x128xf32>
    %16 = vector.shape_cast %14 : vector<16x128xf32> to vector<2x8x128xf32>
    %cst_6 = arith.constant dense<0.000000e+00> : vector<8x128xf32>
    %17 = vector.multi_reduction <add>, %16, %cst_6 [0] : vector<2x8x128xf32> to vector<8x128xf32>
    %18 = arith.addf %15, %17 : vector<8x128xf32>
    %c0_7 = arith.constant 0 : index
    %c0_8 = arith.constant 0 : index
    %19 = vector.load %arg2[%c0_7, %c0_8] : memref<8x128xf32, #tpu.memory_space<vmem>>, vector<8x128xf32>
    tpu.vector_store %arg2[%c0_7, %c0_8], %18 {strides = array<i32>} : memref<8x128xf32, #tpu.memory_space<vmem>>, vector<8x128xf32>,
    return
  }
  func.func @transform_0(%arg0: i32) -> (i32, i32) {
    %c0_i32 = arith.constant 0 : i32
    %c0_i32_0 = arith.constant 0 : i32
    return %arg0, %c0_i32 : i32, i32
  }
  func.func @transform_1(%arg0: i32) -> (i32, i32) {
    %c0_i32 = arith.constant 0 : i32
    %c0_i32_0 = arith.constant 0 : i32
    %c0_i32_1 = arith.constant 0 : i32
    return %c0_i32, %c0_i32_0 : i32, i32
  }
}

</mosaic_0001>

<bundles_post_ra>
// kernel: tpu_custom_call.1
= control target key start
LH: loop header
LB: loop body
LE: loop exit
PB: predicated region body
PF: predicated region fallthrough
CT: control target
= control target key end

     0   :  { %6 = vsyncpa [#allocation3], 0  ;;  %s158_s0 = inlined_call_operand.hbm [shape: f32[16,128], index: 0, kind: input, shape index: {}]   ;;  %s159_s1 = inlined_call_operand.hbm [shape: f32[8,128], index: 1, kind: output, shape index: {}]  }
   0x1   :  { %7 = vsyncpa [#allocation4], 0  ;;  %s138_s6 = smov [#allocation2]  }
   0x2   :  { %s13_s7 = sshll.u32 %s138_s6, 4  ;;  %s14_s7 = int_to_ptr.vmem [resolvable:$true] %s13_s7 }
   0x3   :  { %s102_s8 = scalar_lea.vmem %s14_s7, 256  ;;  %p107_p1 = scmp.lt.s32.totalorder %s14_s7, %s14_s7 }
   0x4   :  { %p103_p0 = scmp.ne.s32.totalorder %s14_s7, %s102_s8  ;;  %p108_p2 = scmp.lt.s32.totalorder %s102_s8, %s102_s8 }
   0x6   :  { %p109_p3 = por %p108_p2, %p107_p1 }
   0x8   :  { %p110_p4 = pnand %p109_p3, %p103_p0 }
   0xa   :  { %113 = shalt.err (!%p110_p4)
}
   0xb   :  { %s139_s9 = smov 128   ;;  %s140_s10 = smov 8  }
   0xc   :  { %19 = dma.hbm_to_vmem [thread:$0]  %s158_s0, 256, %s14_s7, [#allocation3], %s139_s9, %s139_s9, %s140_s10  }
   0xd   :  { %134 = dma.done.wait [#allocation3], 256  }
   0xe   :  { %135 = vsyncadd [#allocation3], 4294967040  ;;  %v28_v0 = vld [vmem:[#allocation2] sm:$0xff]  ;;  %v29_v1 = vld [vmem:[#allocation2 + $0x8] sm:$0xff]  ;;  %s141_s0 = smov [#allocation5]  }
   0xf   :  { %v32_v2 = vand.u32 2147483647, %v28_v0  ;;  %v33_v3 = vand.u32 2147483647, %v29_v1  ;;  %v30_v20 = vmax.f32 %v28_v0, 0.0  ;;  %v31_v23 = vmax.f32 %v29_v1, 0.0 }
  0x10   :  { %s72_s13 = sshll.u32 %s141_s0, 4  ;;  %s73_s13 = int_to_ptr.vmem [resolvable:$true] %s72_s13 }
  0x11   :  { %v34_v4 = vsub.f32 0.0, %v32_v2  ;;  %v35_v5 = vsub.f32 0.0, %v33_v3  ;;  %s114_s14 = scalar_lea.vmem %s73_s13, 128  ;;  %p119_p6 = scmp.lt.s32.totalorder %s73_s13, %s73_s13 }
  0x12   :  { %p115_p5 = scmp.ne.s32.totalorder %s73_s13, %s114_s14  ;;  %p120_p7 = scmp.lt.s32.totalorder %s114_s14, %s114_s14 }
  0x13   :  { %v36_v6 = vmul.f32 1.442695, %v34_v4  ;;  %v38_v7 = vmul.f32 1.442695, %v35_v5 }
  0x14   :  { %p121_p8 = por %p120_p7, %p119_p6 }
  0x15   :  { %86 = vpow2.f32 %v36_v6 }
  0x16   :  { %88 = vpow2.f32 %v38_v7  ;;  %p122_p9 = pnand %p121_p8, %p115_p5 }
  0x22   :  { %v87_v8 = vpop.eup %86 }
  0x23   :  { %v89_v9 = vpop.eup %88  ;;  %v40_v10 = vadd.f32 1.0, %v87_v8  ;;  %v43_v12 = vmul.f32 -0.5, %v87_v8  ;;  %v46_v15 = vand.u32 2147483647, %v87_v8 }
  0x24   :  { %v49_v11 = vadd.f32 1.0, %v89_v9  ;;  %v52_v13 = vmul.f32 -0.5, %v89_v9  ;;  %v55_v17 = vand.u32 2147483647, %v89_v9 }
  0x25   :  { %90 = vlog2.f32 %v40_v10  ;;  %v44_v14 = vadd.f32 1.0, %v43_v12  ;;  %vm47_vm0 = vcmp.lt.f32.partialorder %v46_v15, 0.0004427343 }
  0x26   :  { %92 = vlog2.f32 %v49_v11  ;;  %v53_v16 = vadd.f32 1.0, %v52_v13  ;;  %vm56_vm1 = vcmp.lt.f32.partialorder %v55_v17, 0.0004427343 }
  0x27   :  { %v45_v18 = vmul.f32 %v87_v8, %v44_v14 }
  0x28   :  { %v54_v21 = vmul.f32 %v89_v9, %v53_v16 }
  0x32   :  { %v91_v19 = vpop.eup %90 }
  0x33   :  { %v93_v22 = vpop.eup %92  ;;  %v42_v24 = vmul.f32 0.6931472, %v91_v19 }
  0x34   :  { %v51_v25 = vmul.f32 0.6931472, %v93_v22 }
  0x35   :  { %v48_v26 = vsel %vm47_vm0, %v45_v18, %v42_v24 }
  0x36   :  { %v57_v27 = vsel %vm56_vm1, %v54_v21, %v51_v25  ;;  %v58_v28 = vadd.f32 %v48_v26, %v30_v20 }
  0x37   :  { %v59_v29 = vadd.f32 %v57_v27, %v31_v23 }
  0x38   :  { %v60_v30 = vsub.f32 %v58_v28, %v28_v0 }
  0x39   :  { %v61_v31 = vsub.f32 %v59_v29, %v29_v1 }
  0x3b   :  { %v63_v32 = vadd.f32 %v61_v31, %v60_v30 }
  0x3d   :  { %65 = vst [vmem:[#allocation5] sm:$0xff] %v63_v32 }
  0x3e   :  { %125 = shalt.err (!%p122_p9)
}
  0x3f   :  { %75 = dma.vmem_to_hbm [thread:$0]  %s73_s13, 128, %s159_s1, [#allocation4]  }
  0x40   :  { %136 = dma.done.wait [#allocation4], 128  }
  0x41   :  { %137 = vsyncadd [#allocation4], 4294967168 }
  0x42   :  { %79 = vsyncpa [#allocation3], 1 }
  0x43   :  { %80 = vsyncpa [#allocation4], 1 }

</bundles_post_ra>
